<compile_context>
chip_gen: v6e
topology: v6e:2x2x1
jax: 0.10.0
libtpu: 0.0.40
codegen_flags: <defaults>
</compile_context>

<pallas_src>
import functools

import jax
import jax.numpy as jnp
from jax.experimental import pallas as pl
from jax.experimental.pallas import tpu as pltpu

EPS = 1e-5
EXPANSION = 4


def _pick_tile(dim, pref):
    """Largest 128-multiple tile <= pref dividing dim, else the full dim.

    pref is sized so that double-buffered tiles stay well inside the scoped
    VMEM limit on every generation (v7x has only 64 MiB physical).
    """
    if dim <= pref:
        return dim
    for t in (pref, 512, 256, 128):
        if t <= pref and dim % t == 0:
            return t
    return dim


# ------------------------------------------------------------------ matmul --
def _matmul_kernel(a_ref, w_ref, o_ref):
    o_ref[...] = jnp.dot(
        a_ref[...], w_ref[...], preferred_element_type=jnp.float32
    ).astype(o_ref.dtype)


def matmul(a, w):
    """(M, K) @ (K, N) -> (M, N); rows tiled over a parallel grid."""
    m, k = a.shape
    k2, n = w.shape
    assert k == k2
    tm = _pick_tile(m, 512)
    return pl.pallas_call(
        _matmul_kernel,
        out_shape=jax.ShapeDtypeStruct((m, n), jnp.float32),
        grid=(pl.cdiv(m, tm),),
        in_specs=[
            pl.BlockSpec((tm, k), lambda i: (i, 0)),
            pl.BlockSpec((k, n), lambda i: (0, 0)),
        ],
        out_specs=pl.BlockSpec((tm, n), lambda i: (i, 0)),
        compiler_params=pltpu.CompilerParams(
            dimension_semantics=("parallel",)
        ),
    )(a, w)


# -------------------------------------------------------------- batch norm --
def _bn_kernel(x_ref, g_ref, b_ref, o_ref, *, apply_relu):
    x = x_ref[...]
    n_inv = 1.0 / x.shape[0]
    # Per-channel (per-lane) stats over the row axis, accumulated in f32.
    mean = jnp.sum(x, axis=0, keepdims=True, dtype=jnp.float32) * n_inv
    centered = x.astype(jnp.float32) - mean
    var = jnp.sum(centered * centered, axis=0, keepdims=True) * n_inv
    inv_std = jax.lax.rsqrt(var + EPS)          # (1, TC) row only -> EUP
    scale = g_ref[...].astype(jnp.float32) * inv_std
    shift = b_ref[...].astype(jnp.float32) - mean * scale
    y = x.astype(jnp.float32) * scale + shift   # one fused FMA per element
    if apply_relu:
        y = jnp.maximum(y, 0.0)
    o_ref[...] = y.astype(o_ref.dtype)


def _bn_add_relu_kernel(x_ref, r_ref, g_ref, b_ref, pre_ref, out_ref):
    x = x_ref[...]
    n_inv = 1.0 / x.shape[0]
    mean = jnp.sum(x, axis=0, keepdims=True, dtype=jnp.float32) * n_inv
    centered = x.astype(jnp.float32) - mean
    var = jnp.sum(centered * centered, axis=0, keepdims=True) * n_inv
    inv_std = jax.lax.rsqrt(var + EPS)
    scale = g_ref[...].astype(jnp.float32) * inv_std
    shift = b_ref[...].astype(jnp.float32) - mean * scale
    pre = x.astype(jnp.float32) * scale + shift + r_ref[...].astype(jnp.float32)
    pre_ref[...] = pre.astype(pre_ref.dtype)
    out_ref[...] = jnp.maximum(pre, 0.0).astype(out_ref.dtype)


def batch_norm(x2d, gamma, beta, *, relu):
    m, c = x2d.shape
    tc = _pick_tile(c, 512)
    g2 = gamma.reshape(1, c)
    b2 = beta.reshape(1, c)
    return pl.pallas_call(
        functools.partial(_bn_kernel, apply_relu=relu),
        out_shape=jax.ShapeDtypeStruct((m, c), x2d.dtype),
        grid=(pl.cdiv(c, tc),),
        in_specs=[
            pl.BlockSpec((m, tc), lambda j: (0, j)),
            pl.BlockSpec((1, tc), lambda j: (0, j)),
            pl.BlockSpec((1, tc), lambda j: (0, j)),
        ],
        out_specs=pl.BlockSpec((m, tc), lambda j: (0, j)),
        compiler_params=pltpu.CompilerParams(
            dimension_semantics=("parallel",)
        ),
    )(x2d, g2, b2)


def batch_norm_add_relu(x2d, res2d, gamma, beta):
    """Fused bn3 + residual add + relu; returns (preact, out)."""
    m, c = x2d.shape
    tc = _pick_tile(c, 512)
    g2 = gamma.reshape(1, c)
    b2 = beta.reshape(1, c)
    pre, out = pl.pallas_call(
        _bn_add_relu_kernel,
        out_shape=(
            jax.ShapeDtypeStruct((m, c), x2d.dtype),
            jax.ShapeDtypeStruct((m, c), x2d.dtype),
        ),
        grid=(pl.cdiv(c, tc),),
        in_specs=[
            pl.BlockSpec((m, tc), lambda j: (0, j)),
            pl.BlockSpec((m, tc), lambda j: (0, j)),
            pl.BlockSpec((1, tc), lambda j: (0, j)),
            pl.BlockSpec((1, tc), lambda j: (0, j)),
        ],
        out_specs=(
            pl.BlockSpec((m, tc), lambda j: (0, j)),
            pl.BlockSpec((m, tc), lambda j: (0, j)),
        ),
        compiler_params=pltpu.CompilerParams(
            dimension_semantics=("parallel",)
        ),
    )(x2d, res2d, g2, b2)
    return pre, out


# --------------------------------------------------------------- im2col 3x3 --
def _im2col_3x3(x, stride):
    """NHWC x -> (N*Ho*Wo, 9*C) patches for a 3x3 / pad=1 / stride conv."""
    n, h, w, c = x.shape
    xp = jnp.pad(x, ((0, 0), (1, 1), (1, 1), (0, 0)))
    ho = (h - 1) // stride + 1
    wo = (w - 1) // stride + 1
    cols = []
    for dy in range(3):
        for dx in range(3):
            cols.append(xp[:, dy:dy + h:stride, dx:dx + w:stride, :])
    patches = jnp.concatenate(cols, axis=-1)          # (N, Ho, Wo, 9*C)
    return patches.reshape(n * ho * wo, 9 * c), ho, wo


# ---------------------------------------------------------------- bottleneck --
def bottleneck_forward(x_nchw, params, *, stride=1, is_last=False):
    # Layout plumbing: NCHW (PyTorch) -> NHWC (lane-dense channels on TPU).
    x = jnp.transpose(x_nchw, (0, 2, 3, 1))
    n, h, w, cin = x.shape
    planes = params["conv1_w"].shape[1]
    cout = EXPANSION * planes

    # conv1 (1x1) + bn1 + relu
    o = matmul(x.reshape(n * h * w, cin), params["conv1_w"])
    o = batch_norm(o, params["bn1_g"], params["bn1_b"], relu=True)

    # conv2 (3x3, stride, pad=1) + bn2 + relu
    cols, ho, wo = _im2col_3x3(o.reshape(n, h, w, planes), stride)
    o = matmul(cols, params["conv2_w"])
    o = batch_norm(o, params["bn2_g"], params["bn2_b"], relu=True)

    # conv3 (1x1)
    o = matmul(o, params["conv3_w"])

    # shortcut
    if stride != 1 or cin != cout:
        xs = x[:, ::stride, ::stride, :].reshape(n * ho * wo, cin)
        sc = matmul(xs, params["sc_w"])
        sc = batch_norm(sc, params["sc_bn_g"], params["sc_bn_b"], relu=False)
    else:
        sc = x.reshape(n * h * w, cin).astype(jnp.float32)

    # bn3 + residual add + relu (fused)
    pre2d, out2d = batch_norm_add_relu(o, sc, params["bn3_g"], params["bn3_b"])

    out = jnp.transpose(out2d.reshape(n, ho, wo, cout), (0, 3, 1, 2))
    pre = jnp.transpose(pre2d.reshape(n, ho, wo, cout), (0, 3, 1, 2))
    return (out, pre) if is_last else out


# ---------------------------------------------------------------- reference --
def _bn_ref(x, g, b):
    mean = jnp.mean(x, axis=(0, 1, 2), keepdims=True)
    var = jnp.mean(jnp.square(x - mean), axis=(0, 1, 2), keepdims=True)
    return (x - mean) * jax.lax.rsqrt(var + EPS) * g + b


def _reference(x_nchw, params, *, stride=1, is_last=False):
    hp = jax.lax.Precision.HIGHEST
    x = jnp.transpose(x_nchw, (0, 2, 3, 1))
    planes = params["conv1_w"].shape[1]
    cout = EXPANSION * planes
    o = jnp.einsum("nhwc,cd->nhwd", x, params["conv1_w"], precision=hp)
    o = jax.nn.relu(_bn_ref(o, params["bn1_g"], params["bn1_b"]))
    w2 = params["conv2_w"].reshape(3, 3, planes, planes)
    o = jax.lax.conv_general_dilated(
        o, w2, (stride, stride), ((1, 1), (1, 1)),
        dimension_numbers=("NHWC", "HWIO", "NHWC"), precision=hp)
    o = jax.nn.relu(_bn_ref(o, params["bn2_g"], params["bn2_b"]))
    o = jnp.einsum("nhwc,cd->nhwd", o, params["conv3_w"], precision=hp)
    o = _bn_ref(o, params["bn3_g"], params["bn3_b"])
    if stride != 1 or x.shape[-1] != cout:
        sc = jnp.einsum("nhwc,cd->nhwd", x[:, ::stride, ::stride, :],
                        params["sc_w"], precision=hp)
        sc = _bn_ref(sc, params["sc_bn_g"], params["sc_bn_b"])
    else:
        sc = x
    pre = o + sc
    out = jax.nn.relu(pre)
    out = jnp.transpose(out, (0, 3, 1, 2))
    pre = jnp.transpose(pre, (0, 3, 1, 2))
    return (out, pre) if is_last else out


def _init_params(key, in_planes, planes):
    cout = EXPANSION * planes
    ks = jax.random.split(key, 12)
    # PyTorch-layout conv weights (O, I, kH, kW), converted to matmul layouts.
    w1 = 0.2 * jax.random.normal(ks[0], (planes, in_planes, 1, 1), jnp.float32)
    w2 = 0.2 * jax.random.normal(ks[1], (planes, planes, 3, 3), jnp.float32)
    w3 = 0.2 * jax.random.normal(ks[2], (cout, planes, 1, 1), jnp.float32)
    ws = 0.2 * jax.random.normal(ks[3], (cout, in_planes, 1, 1), jnp.float32)
    return {
        "conv1_w": jnp.transpose(w1[:, :, 0, 0]),                     # (Cin, planes)
        "conv2_w": jnp.transpose(w2, (2, 3, 1, 0)).reshape(9 * planes, planes),
        "conv3_w": jnp.transpose(w3[:, :, 0, 0]),                     # (planes, 4*planes)
        "sc_w": jnp.transpose(ws[:, :, 0, 0]),                        # (Cin, 4*planes)
        "bn1_g": 1.0 + 0.1 * jax.random.normal(ks[4], (planes,), jnp.float32),
        "bn1_b": 0.1 * jax.random.normal(ks[5], (planes,), jnp.float32),
        "bn2_g": 1.0 + 0.1 * jax.random.normal(ks[6], (planes,), jnp.float32),
        "bn2_b": 0.1 * jax.random.normal(ks[7], (planes,), jnp.float32),
        "bn3_g": 1.0 + 0.1 * jax.random.normal(ks[8], (cout,), jnp.float32),
        "bn3_b": 0.1 * jax.random.normal(ks[9], (cout,), jnp.float32),
        "sc_bn_g": 1.0 + 0.1 * jax.random.normal(ks[10], (cout,), jnp.float32),
        "sc_bn_b": 0.1 * jax.random.normal(ks[11], (cout,), jnp.float32),
    }


if __name__ == "__main__":
    key = jax.random.PRNGKey(0)
    kx, kp = jax.random.split(key)

    N, IN_PLANES, PLANES, H, W = 2, 16, 8, 8, 8
    STRIDE, IS_LAST = 1, True   # in_planes != 4*planes -> conv shortcut path

    x = jax.random.normal(kx, (N, IN_PLANES, H, W), dtype=jnp.float32)
    params = _init_params(kp, IN_PLANES, PLANES)

    out, pre = bottleneck_forward(x, params, stride=STRIDE, is_last=IS_LAST)
    out, pre = jax.block_until_ready((out, pre))

    ref_out, ref_pre = _reference(x, params, stride=STRIDE, is_last=IS_LAST)

    assert out.shape == (N, EXPANSION * PLANES, H, W)
    assert pre.shape == (N, EXPANSION * PLANES, H, W)
    assert jnp.allclose(out, ref_out, atol=2e-3, rtol=2e-3), "out mismatch"
    assert jnp.allclose(pre, ref_pre, atol=2e-3, rtol=2e-3), "preact mismatch"

    print("KERNEL_OK")
</pallas_src>

<mosaic_0001>
module attributes {stable_mosaic.version = 11 : i64} {
  func.func @_matmul_kernel(%arg0: i32, %arg1: memref<128x16xf32, #tpu.memory_space<vmem>>, %arg2: memref<16x8xf32, #tpu.memory_space<vmem>>, %arg3: memref<128x8xf32, #tpu.memory_space<vmem>>) attributes {dimension_semantics = [#tpu.dimension_semantics<parallel>], iteration_bounds = array<i64: 1>, scalar_prefetch = 0 : i64, scratch_operands = 0 : i64, tpu.core_type = #tpu.core_type<tc>, window_params = [{transform_indices = @transform_0, window_bounds = array<i64: 128, 16>}, {pipeline_mode = #tpu.pipeline_mode<synchronous>, transform_indices = @transform_1, window_bounds = array<i64: 16, 8>}, {transform_indices = @transform_2, window_bounds = array<i64: 128, 8>}]} {
    %c0 = arith.constant 0 : index
    %c0_0 = arith.constant 0 : index
    %0 = vector.load %arg1[%c0, %c0_0] : memref<128x16xf32, #tpu.memory_space<vmem>>, vector<128x16xf32>
    %c0_1 = arith.constant 0 : index
    %c0_2 = arith.constant 0 : index
    %1 = vector.load %arg2[%c0_1, %c0_2] : memref<16x8xf32, #tpu.memory_space<vmem>>, vector<16x8xf32>
    %cst = arith.constant dense<0.000000e+00> : vector<128x8xf32>
    %2 = tpu.matmul %0, %1, %cst {dimension_numbers = #tpu.dot_dimension_numbers<[1], [0], [0], [1], [0, 0, 1, 1], [], []>} : vector<128x16xf32>, vector<16x8xf32>, vector<128x8xf32> -> vector<128x8xf32>
    %c0_3 = arith.constant 0 : index
    %c0_4 = arith.constant 0 : index
    %3 = vector.load %arg3[%c0_3, %c0_4] : memref<128x8xf32, #tpu.memory_space<vmem>>, vector<128x8xf32>
    tpu.vector_store %arg3[%c0_3, %c0_4], %2 {strides = array<i32>} : memref<128x8xf32, #tpu.memory_space<vmem>>, vector<128x8xf32>,
    return
  }
  func.func @transform_0(%arg0: i32) -> (i32, i32) {
    %c0_i32 = arith.constant 0 : i32
    %c0_i32_0 = arith.constant 0 : i32
    return %arg0, %c0_i32 : i32, i32
  }
  func.func @transform_1(%arg0: i32) -> (i32, i32) {
    %c0_i32 = arith.constant 0 : i32
    %c0_i32_0 = arith.constant 0 : i32
    %c0_i32_1 = arith.constant 0 : i32
    return %c0_i32, %c0_i32_0 : i32, i32
  }
  func.func @transform_2(%arg0: i32) -> (i32, i32) {
    %c0_i32 = arith.constant 0 : i32
    %c0_i32_0 = arith.constant 0 : i32
    return %arg0, %c0_i32 : i32, i32
  }
}

</mosaic_0001>

<bundles_post_ra>
// kernel: tpu_custom_call.1
= control target key start
LH: loop header
LB: loop body
LE: loop exit
PB: predicated region body
PF: predicated region fallthrough
CT: control target
= control target key end

     0   :  { %vm29_vm0 = vcmask 130048   ;;  %vm223_vm1 = vcmask 64512   ;;  %s459_s1 = inlined_call_operand.vmem [shape: f32[16,8], index: 1, kind: input, shape index: {}]   ;;  %s460_s0 = inlined_call_operand.vmem [shape: f32[128,16], index: 0, kind: input, shape index: {}]   ;;  %s461_s2 = inlined_call_operand.vmem [shape: f32[128,8], index: 2, kind: output, shape index: {}]  }
   0x1   :  { %v28_v0 = vld [vmem:[%s459_s1 + $0x8] sm:$0xff]  ;;  %v27_v1 = vld [vmem:[%s459_s1] sm:$0xff]  ;;  %v13_v6 = vld [vmem:[%s460_s0 + $0x10] sm:$0xff] }
   0x2   :  { %278 = vmatprep.subr.mxu0 %v28_v0  ;;  %306 = vmatprep.subr.mxu1 %v28_v0  ;;  %v11_v2 = vld [vmem:[%s460_s0] sm:$0xff]  ;;  %v12_v4 = vld [vmem:[%s460_s0 + $0x8] sm:$0xff]  ;;  %v21_v7 = vld [vmem:[%s460_s0 + $0x50] sm:$0xff] }
   0x3   :  { %279 = vmatpush3.msra.mxu0 %v28_v0  ;;  %308 = vmatpush3.msra.mxu1 %v28_v0  ;;  %v19_v3 = vld [vmem:[%s460_s0 + $0x40] sm:$0xff]  ;;  %v20_v5 = vld [vmem:[%s460_s0 + $0x48] sm:$0xff]  ;;  %v14_v8 = vld [vmem:[%s460_s0 + $0x18] sm:$0xff] }
   0x4   :  { %280 = vmatprep.subr.mxu0 %v27_v1  ;;  %307 = vmatprep.subr.mxu1 %v27_v1  ;;  %v22_v9 = vld [vmem:[%s460_s0 + $0x58] sm:$0xff]  ;;  %v15_v10 = vld [vmem:[%s460_s0 + $0x20] sm:$0xff]  ;;  %v16_v12 = vld [vmem:[%s460_s0 + $0x28] sm:$0xff] }
   0x5   :  { %281 = vmatpush3.msra.mxu0 %v27_v1  ;;  %309 = vmatpush3.msra.mxu1 %v27_v1  ;;  %v23_v11 = vld [vmem:[%s460_s0 + $0x60] sm:$0xff]  ;;  %v24_v13 = vld [vmem:[%s460_s0 + $0x68] sm:$0xff]  ;;  %v17_v14 = vld [vmem:[%s460_s0 + $0x30] sm:$0xff] }
   0x6   :  { %282 = vmatprep.mubr.msk.f32.mxu0 %vm29_vm0, %v11_v2  ;;  %294 = vmatprep.mubr.msk.f32.mxu1 %vm29_vm0, %v19_v3  ;;  %v25_v15 = vld [vmem:[%s460_s0 + $0x70] sm:$0xff]  ;;  %v18_v16 = vld [vmem:[%s460_s0 + $0x38] sm:$0xff] }
   0x7   :  { %283 = vmatmul.mubr.msk.f32.vlgmr.msra.gmra.mxu0 %vm29_vm0, %v12_v4  ;;  %295 = vmatmul.mubr.msk.f32.vlgmr.msra.gmra.mxu1 %vm29_vm0, %v20_v5  ;;  %v26_v17 = vld [vmem:[%s460_s0 + $0x78] sm:$0xff] }
   0x8   :  { %285 = vmatprep.mubr.msk.f32.mxu0 %vm29_vm0, %v13_v6  ;;  %297 = vmatprep.mubr.msk.f32.mxu1 %vm29_vm0, %v21_v7 }
   0xb   :  { %286 = vmatmul.mubr.msk.f32.gmra.mxu0 %vm29_vm0, %v14_v8  ;;  %298 = vmatmul.mubr.msk.f32.gmra.mxu1 %vm29_vm0, %v22_v9 }
   0xc   :  { %288 = vmatprep.mubr.msk.f32.mxu0 %vm29_vm0, %v15_v10  ;;  %300 = vmatprep.mubr.msk.f32.mxu1 %vm29_vm0, %v23_v11 }
   0xf   :  { %289 = vmatmul.mubr.msk.f32.gmra.mxu0 %vm29_vm0, %v16_v12  ;;  %301 = vmatmul.mubr.msk.f32.gmra.mxu1 %vm29_vm0, %v24_v13 }
  0x10   :  { %291 = vmatprep.mubr.msk.f32.mxu0 %vm29_vm0, %v17_v14  ;;  %303 = vmatprep.mubr.msk.f32.mxu1 %vm29_vm0, %v25_v15 }
  0x13   :  { %292 = vmatmul.mubr.msk.f32.gmra.mxu0 %vm29_vm0, %v18_v16  ;;  %304 = vmatmul.mubr.msk.f32.gmra.mxu1 %vm29_vm0, %v26_v17 }
  0xc7   :  { %v284_v18 = vpop.f32.mrf.mxu0  ;;  %v296_v19 = vpop.f32.mrf.mxu1 }
  0xc8   :  { %225 = vst.msk [vmem:[%s461_s2 + $0x8] sm:$0xff] %vm223_vm1, %v284_v18  ;;  %233 = vst.msk [vmem:[%s461_s2 + $0x48] sm:$0xff] %vm223_vm1, %v296_v19 }
  0xc9   :  { %v144_v20 = vpop.f32.mrf.mxu0  ;;  %v184_v21 = vpop.f32.mrf.mxu1 }
  0xca   :  { %224 = vst.msk [vmem:[%s461_s2] sm:$0xff] %vm223_vm1, %v144_v20  ;;  %232 = vst.msk [vmem:[%s461_s2 + $0x40] sm:$0xff] %vm223_vm1, %v184_v21 }
  0xcb   :  { %v287_v22 = vpop.f32.mrf.mxu0  ;;  %v299_v23 = vpop.f32.mrf.mxu1 }
  0xcc   :  { %227 = vst.msk [vmem:[%s461_s2 + $0x18] sm:$0xff] %vm223_vm1, %v287_v22  ;;  %235 = vst.msk [vmem:[%s461_s2 + $0x58] sm:$0xff] %vm223_vm1, %v299_v23 }
  0xcd   :  { %v154_v24 = vpop.f32.mrf.mxu0  ;;  %v194_v25 = vpop.f32.mrf.mxu1 }
  0xce   :  { %226 = vst.msk [vmem:[%s461_s2 + $0x10] sm:$0xff] %vm223_vm1, %v154_v24  ;;  %234 = vst.msk [vmem:[%s461_s2 + $0x50] sm:$0xff] %vm223_vm1, %v194_v25 }
  0xcf   :  { %v290_v26 = vpop.f32.mrf.mxu0  ;;  %v302_v27 = vpop.f32.mrf.mxu1 }
  0xd0   :  { %229 = vst.msk [vmem:[%s461_s2 + $0x28] sm:$0xff] %vm223_vm1, %v290_v26  ;;  %237 = vst.msk [vmem:[%s461_s2 + $0x68] sm:$0xff] %vm223_vm1, %v302_v27 }
  0xd1   :  { %v164_v28 = vpop.f32.mrf.mxu0  ;;  %v204_v29 = vpop.f32.mrf.mxu1 }
  0xd2   :  { %228 = vst.msk [vmem:[%s461_s2 + $0x20] sm:$0xff] %vm223_vm1, %v164_v28  ;;  %236 = vst.msk [vmem:[%s461_s2 + $0x60] sm:$0xff] %vm223_vm1, %v204_v29 }
  0xd3   :  { %v293_v30 = vpop.f32.mrf.mxu0  ;;  %v305_v31 = vpop.f32.mrf.mxu1 }
  0xd4   :  { %231 = vst.msk [vmem:[%s461_s2 + $0x38] sm:$0xff] %vm223_vm1, %v293_v30  ;;  %239 = vst.msk [vmem:[%s461_s2 + $0x78] sm:$0xff] %vm223_vm1, %v305_v31 }
  0xd5   :  { %v174_v32 = vpop.f32.mrf.mxu0  ;;  %v214_v33 = vpop.f32.mrf.mxu1 }
  0xd6   :  { %230 = vst.msk [vmem:[%s461_s2 + $0x30] sm:$0xff] %vm223_vm1, %v174_v32  ;;  %238 = vst.msk [vmem:[%s461_s2 + $0x70] sm:$0xff] %vm223_vm1, %v214_v33 }

</bundles_post_ra>
